<compile_context>
chip_gen: v7x
topology: tpu7x:2x2x1
jax: 0.10.0
libtpu: 0.0.40
codegen_flags: <defaults>
</compile_context>

<pallas_src>
import jax
import jax.numpy as jnp
from jax.experimental import pallas as pl
from jax.experimental.pallas import tpu as pltpu


def _round_up(x, m):
    return ((x + m - 1) // m) * m


def discriminator_kernel(z_ref, w1_ref, b1_ref, w2_ref, b2_ref, o_ref):
    # z:  [tb, V]     w1: [V, M]    b1: [1, M]
    # w2: [1, M]      b2: SMEM f32[1]           o: [tb, 1]
    z = z_ref[...]

    # First Linear (vocab -> mid) on the MXU, f32 accumulation, bias broadcast.
    h = jnp.dot(z, w1_ref[...], preferred_element_type=jnp.float32) + b1_ref[...]

    # LeakyReLU, PyTorch default negative_slope = 0.01 (VPU).
    h = jnp.where(h > 0, h, jnp.float32(0.01) * h)

    # Second Linear (mid -> 1) as VPU multiply + XLU lane reduction instead of
    # an N=1 MXU matmul; add the SMEM scalar bias.
    out = jnp.sum(h * w2_ref[...], axis=-1, keepdims=True) + b2_ref[0]

    o_ref[...] = out.astype(o_ref.dtype)


def discriminator_forward(z, w1, b1, w2_row, b2, *, batch_tile=256):
    """Fused Discriminator forward as a single Pallas kernel.

    z:      [B, V]   float32
    w1:     [V, M]   (pre-transposed, [in, out])
    b1:     [1, M]
    w2_row: [1, M]   (pre-transposed row of the [M, 1] weight)
    b2:     [1]      (scalar bias, lives in SMEM)
    returns [B, 1]
    """
    B, V = z.shape
    M = w1.shape[1]
    assert w1.shape == (V, M) and b1.shape == (1, M)
    assert w2_row.shape == (1, M) and b2.shape == (1,)

    # Batch tiling: weights stay resident across grid steps; only z / out move.
    tb = batch_tile if B >= batch_tile else _round_up(max(B, 1), 8)
    Bp = _round_up(B, tb)
    nb = Bp // tb
    zp = jnp.pad(z, ((0, Bp - B), (0, 0))) if Bp != B else z

    out = pl.pallas_call(
        discriminator_kernel,
        out_shape=jax.ShapeDtypeStruct((Bp, 1), z.dtype),
        grid_spec=pltpu.PrefetchScalarGridSpec(
            num_scalar_prefetch=0,
            grid=(nb,),
            in_specs=[
                pl.BlockSpec((tb, V), lambda i: (i, 0)),   # z rows (streamed)
                pl.BlockSpec((V, M), lambda i: (0, 0)),    # w1 (resident)
                pl.BlockSpec((1, M), lambda i: (0, 0)),    # b1 (resident)
                pl.BlockSpec((1, M), lambda i: (0, 0)),    # w2 row (resident)
                pl.BlockSpec(memory_space=pltpu.MemorySpace.SMEM),  # b2 scalar
            ],
            out_specs=pl.BlockSpec((tb, 1), lambda i: (i, 0)),
        ),
        compiler_params=pltpu.CompilerParams(
            # Batch axis is independent -> shards across the 2 TCs on v7x.
            dimension_semantics=("parallel",),
        ),
    )(zp, w1, b1, w2_row, b2)

    return out[:B]


def init_params(key, vocab_size, dec_mid_layer, dtype=jnp.float32):
    """PyTorch-Linear-style init (uniform +/- 1/sqrt(fan_in)).

    Weights stored as [in, out]; the second layer's weight is stored as a
    [1, mid] row (pre-transposed) for the VPU multiply-reduce.
    """
    k1, k2, k3, k4 = jax.random.split(key, 4)
    bound1 = 1.0 / jnp.sqrt(vocab_size)
    bound2 = 1.0 / jnp.sqrt(dec_mid_layer)
    w1 = jax.random.uniform(k1, (vocab_size, dec_mid_layer), dtype,
                            minval=-bound1, maxval=bound1)
    b1 = jax.random.uniform(k2, (1, dec_mid_layer), dtype,
                            minval=-bound1, maxval=bound1)
    w2_row = jax.random.uniform(k3, (1, dec_mid_layer), dtype,
                                minval=-bound2, maxval=bound2)
    b2 = jax.random.uniform(k4, (1,), dtype, minval=-bound2, maxval=bound2)
    return w1, b1, w2_row, b2


def reference_forward(z, w1, b1, w2_row, b2):
    h = z @ w1 + b1
    h = jnp.where(h > 0, h, 0.01 * h)
    return h @ w2_row.T + b2


if __name__ == "__main__":
    # Small shapes consistent with the module: opt['vocab_size']=256,
    # opt['dec_mid_layer']=128, batch=8.
    batch, vocab_size, dec_mid_layer = 8, 256, 128

    key = jax.random.PRNGKey(0)
    kz, kp = jax.random.split(key)
    z = jax.random.normal(kz, (batch, vocab_size), dtype=jnp.float32)
    w1, b1, w2_row, b2 = init_params(kp, vocab_size, dec_mid_layer)

    out = discriminator_forward(z, w1, b1, w2_row, b2)
    out = jax.block_until_ready(out)

    ref = reference_forward(z, w1, b1, w2_row, b2)
    assert out.shape == (batch, 1), out.shape
    assert jnp.allclose(out, ref, atol=1e-5, rtol=1e-5), "mismatch vs reference"

    print("KERNEL_OK")
</pallas_src>

<mosaic_0001>
module attributes {stable_mosaic.version = 11 : i64} {
  func.func @discriminator_kernel(%arg0: i32, %arg1: memref<8x256xf32, #tpu.memory_space<vmem>>, %arg2: memref<256x128xf32, #tpu.memory_space<vmem>>, %arg3: memref<1x128xf32, #tpu.memory_space<vmem>>, %arg4: memref<1x128xf32, #tpu.memory_space<vmem>>, %arg5: memref<1xf32, #tpu.memory_space<smem>>, %arg6: memref<8x1xf32, #tpu.memory_space<vmem>>) attributes {dimension_semantics = [#tpu.dimension_semantics<parallel>], iteration_bounds = array<i64: 1>, scalar_prefetch = 0 : i64, scratch_operands = 0 : i64, tpu.core_type = #tpu.core_type<tc>, window_params = [{transform_indices = @transform_0, window_bounds = array<i64: 8, 256>}, {pipeline_mode = #tpu.pipeline_mode<synchronous>, transform_indices = @transform_1, window_bounds = array<i64: 256, 128>}, {pipeline_mode = #tpu.pipeline_mode<synchronous>, transform_indices = @transform_2, window_bounds = array<i64: 1, 128>}, {pipeline_mode = #tpu.pipeline_mode<synchronous>, transform_indices = @transform_3, window_bounds = array<i64: 1, 128>}, {transform_indices = @transform_4, window_bounds = array<i64: 1>}, {transform_indices = @transform_5, window_bounds = array<i64: 8, 1>}]} {
    %c0 = arith.constant 0 : index
    %c0_0 = arith.constant 0 : index
    %0 = vector.load %arg1[%c0, %c0_0] : memref<8x256xf32, #tpu.memory_space<vmem>>, vector<8x256xf32>
    %c0_1 = arith.constant 0 : index
    %c0_2 = arith.constant 0 : index
    %1 = vector.load %arg2[%c0_1, %c0_2] : memref<256x128xf32, #tpu.memory_space<vmem>>, vector<256x128xf32>
    %cst = arith.constant dense<0.000000e+00> : vector<8x128xf32>
    %2 = tpu.matmul %0, %1, %cst {dimension_numbers = #tpu.dot_dimension_numbers<[1], [0], [0], [1], [0, 0, 1, 1], [], []>} : vector<8x256xf32>, vector<256x128xf32>, vector<8x128xf32> -> vector<8x128xf32>
    %c0_3 = arith.constant 0 : index
    %c0_4 = arith.constant 0 : index
    %3 = vector.load %arg3[%c0_3, %c0_4] : memref<1x128xf32, #tpu.memory_space<vmem>>, vector<1x128xf32>
    %4 = vector.broadcast %3 : vector<1x128xf32> to vector<8x128xf32>
    %5 = arith.addf %2, %4 : vector<8x128xf32>
    %cst_5 = arith.constant 0.000000e+00 : f32
    %6 = vector.broadcast %cst_5 : f32 to vector<8x128xf32>
    %7 = arith.cmpf ogt, %5, %6 : vector<8x128xf32>
    %cst_6 = arith.constant 0.00999999977 : f32
    %8 = vector.broadcast %cst_6 : f32 to vector<8x128xf32>
    %9 = arith.mulf %8, %5 : vector<8x128xf32>
    %10 = arith.select %7, %5, %9 : vector<8x128xi1>, vector<8x128xf32>
    %c0_7 = arith.constant 0 : index
    %c0_8 = arith.constant 0 : index
    %11 = vector.load %arg4[%c0_7, %c0_8] : memref<1x128xf32, #tpu.memory_space<vmem>>, vector<1x128xf32>
    %12 = vector.broadcast %11 : vector<1x128xf32> to vector<8x128xf32>
    %13 = arith.mulf %10, %12 : vector<8x128xf32>
    %cst_9 = arith.constant dense<0.000000e+00> : vector<8xf32>
    %14 = vector.multi_reduction <add>, %13, %cst_9 [1] : vector<8x128xf32> to vector<8xf32>
    %15 = vector.shape_cast %14 : vector<8xf32> to vector<8x1xf32>
    %c0_10 = arith.constant 0 : index
    %16 = memref.load %arg5[%c0_10] : memref<1xf32, #tpu.memory_space<smem>>
    %17 = vector.broadcast %16 : f32 to vector<8x1xf32>
    %18 = arith.addf %15, %17 : vector<8x1xf32>
    %c0_11 = arith.constant 0 : index
    %c0_12 = arith.constant 0 : index
    %19 = vector.load %arg6[%c0_11, %c0_12] : memref<8x1xf32, #tpu.memory_space<vmem>>, vector<8x1xf32>
    tpu.vector_store %arg6[%c0_11, %c0_12], %18 {strides = array<i32>} : memref<8x1xf32, #tpu.memory_space<vmem>>, vector<8x1xf32>,
    return
  }
  func.func @transform_0(%arg0: i32) -> (i32, i32) {
    %c0_i32 = arith.constant 0 : i32
    %c0_i32_0 = arith.constant 0 : i32
    return %arg0, %c0_i32 : i32, i32
  }
  func.func @transform_1(%arg0: i32) -> (i32, i32) {
    %c0_i32 = arith.constant 0 : i32
    %c0_i32_0 = arith.constant 0 : i32
    %c0_i32_1 = arith.constant 0 : i32
    return %c0_i32, %c0_i32_0 : i32, i32
  }
  func.func @transform_2(%arg0: i32) -> (i32, i32) {
    %c0_i32 = arith.constant 0 : i32
    %c0_i32_0 = arith.constant 0 : i32
    %c0_i32_1 = arith.constant 0 : i32
    return %c0_i32, %c0_i32_0 : i32, i32
  }
  func.func @transform_3(%arg0: i32) -> (i32, i32) {
    %c0_i32 = arith.constant 0 : i32
    %c0_i32_0 = arith.constant 0 : i32
    %c0_i32_1 = arith.constant 0 : i32
    return %c0_i32, %c0_i32_0 : i32, i32
  }
  func.func @transform_4(%arg0: i32) -> i32 {
    %c0_i32 = arith.constant 0 : i32
    %c0_i32_0 = arith.constant 0 : i32
    return %c0_i32 : i32
  }
  func.func @transform_5(%arg0: i32) -> (i32, i32) {
    %c0_i32 = arith.constant 0 : i32
    %c0_i32_0 = arith.constant 0 : i32
    return %arg0, %c0_i32 : i32, i32
  }
}

</mosaic_0001>

<bundles_post_ra>
// kernel: tpu_custom_call.1
= control target key start
LH: loop header
LB: loop body
LE: loop exit
PB: predicated region body
PF: predicated region fallthrough
CT: control target
= control target key end

     0   :  { %11 = vsyncpa [#allocation4], 0  ;;  %s380_s0 = inlined_call_operand.hbm [shape: f32[8,256], index: 0, kind: input, shape index: {}]   ;;  %s381_s1 = inlined_call_operand.hbm [shape: f32[256,128], index: 1, kind: input, shape index: {}]   ;;  %s382_s2 = inlined_call_operand.vmem [shape: f32[1,128], index: 2, kind: input, shape index: {}]   ;;  %s383_s3 = inlined_call_operand.vmem [shape: f32[1,128], index: 3, kind: input, shape index: {}]   ;;  %s384_s4 = inlined_call_operand.<no memory space> [shape: f32[1], index: 4, kind: input, shape index: {}]   ;;  %s385_s5 = inlined_call_operand.vmem [shape: f32[8,1], index: 5, kind: output, shape index: {}]  }
   0x1   :  { %12 = vsyncpa [#allocation6], 0  ;;  %s303_s18 = smov [#allocation3]   ;;  %s304_s20 = smov [#allocation5]  }
   0x2   :  { %s19_s19 = sshll.u32 %s303_s18, 4  ;;  %s28_s21 = sshll.u32 %s304_s20, 4  ;;  %s20_s19 = int_to_ptr.vmem [resolvable:$true] %s19_s19  ;;  %s337_s21 = int_to_ptr.vmem [resolvable:$true] %s28_s21 }
   0x3   :  { %s255_s24 = scalar_lea.hbm %s380_s0, 256 }
   0x4   :  { %p256_p0 = scmp.ne.s32.totalorder %s380_s0, %s255_s24  ;;  %p259_p1 = scmp.lt.u32.totalorder %s255_s24, %s380_s0 }
   0x6   :  { %p261_p2 = pnand %p259_p1, %p256_p0 }
   0x8   :  { %264 = shalt.err (!%p261_p2)
}
   0x9   :  { %s265_s29 = scalar_lea.vmem %s20_s19, 256  ;;  %p270_p4 = scmp.lt.s32.totalorder %s20_s19, %s20_s19 }
   0xa   :  { %p266_p3 = scmp.ne.s32.totalorder %s20_s19, %s265_s29  ;;  %p271_p5 = scmp.lt.s32.totalorder %s265_s29, %s265_s29 }
   0xc   :  { %p272_p6 = por %p271_p5, %p270_p4 }
   0xe   :  { %p273_p7 = pnand %p272_p6, %p266_p3 }
  0x10   :  { %276 = shalt.err (!%p273_p7)
}
  0x11   :  { %22 = dma.hbm_to_vmem [thread:$0]  %s380_s0, 256, %s20_s19, [#allocation4]  }
  0x12   :  { %s277_s9 = scalar_lea.hbm %s381_s1, 4096 }
  0x13   :  { %p278_p8 = scmp.ne.s32.totalorder %s381_s1, %s277_s9  ;;  %p281_p9 = scmp.lt.u32.totalorder %s277_s9, %s381_s1 }
  0x15   :  { %p283_p10 = pnand %p281_p9, %p278_p8 }
  0x17   :  { %286 = shalt.err (!%p283_p10)
}
  0x18   :  { %s287_s14 = scalar_lea.vmem %s337_s21, 4096  ;;  %p292_p12 = scmp.lt.s32.totalorder %s337_s21, %s337_s21 }
  0x19   :  { %p288_p11 = scmp.ne.s32.totalorder %s337_s21, %s287_s14  ;;  %p293_p13 = scmp.lt.s32.totalorder %s287_s14, %s287_s14 }
  0x1b   :  { %p294_p0 = por %p293_p13, %p292_p12 }
  0x1d   :  { %p295_p1 = pnand %p294_p0, %p288_p11 }
  0x1f   :  { %298 = shalt.err (!%p295_p1)
}
  0x20   :  { %s305_s0 = smov 128   ;;  %s306_s15 = smov 8  }
  0x21   :  { %34 = dma.hbm_to_vmem [thread:$0]  %s381_s1, 4096, %s337_s21, [#allocation6], %s305_s0, %s305_s0, %s306_s15  }
  0x22   :  { %299 = dma.done.wait [#allocation4], 256  }
  0x23   :  { %300 = vsyncadd [#allocation4], 4294967040 }
  0x24   :  { %301 = dma.done.wait [#allocation6], 4096  }
  0x25   :  { %302 = vsyncadd [#allocation6], 4294963200  ;;  %v65_v0 = vld [vmem:[#allocation5 + $0x80] sm:$0xff]  ;;  %v66_v1 = vld [vmem:[#allocation5 + $0x88] sm:$0xff]  ;;  %v172_v59 = vstv %s384_s4  ;;  %vm174_vm1 = vcmask 7168  }
  0x26   :  { %v49_v2 = vld [vmem:[#allocation5] sm:$0xff]  ;;  %v219_v3 = vpack.c.bf16 %v66_v1, %v65_v0  ;;  %v50_v4 = vld [vmem:[#allocation5 + $0x8] sm:$0xff]  ;;  %v67_v5 = vld [vmem:[#allocation5 + $0x90] sm:$0xff] }
  0x27   :  { %v68_v6 = vld [vmem:[#allocation5 + $0x98] sm:$0xff]  ;;  %v221_v7 = vpack.c.bf16 %v50_v4, %v49_v2  ;;  %v51_v9 = vld [vmem:[#allocation5 + $0x10] sm:$0xff]  ;;  %v69_v11 = vld [vmem:[#allocation5 + $0xa0] sm:$0xff] }
  0x28   :  { %v223_v8 = vpack.c.bf16 %v68_v6, %v67_v5  ;;  %v52_v10 = vld [vmem:[#allocation5 + $0x18] sm:$0xff]  ;;  %220 = vmatprep.subr.bf16.mxu0 %v219_v3  ;;  %v70_v12 = vld [vmem:[#allocation5 + $0xa8] sm:$0xff]  ;;  %v53_v15 = vld [vmem:[#allocation5 + $0x20] sm:$0xff] }
  0x29   :  { %222 = vmatpush3.bf16.msra.mxu0 %v221_v7  ;;  %v225_v13 = vpack.c.bf16 %v52_v10, %v51_v9  ;;  %v227_v14 = vpack.c.bf16 %v70_v12, %v69_v11  ;;  %v54_v16 = vld [vmem:[#allocation5 + $0x28] sm:$0xff]  ;;  %v71_v17 = vld [vmem:[#allocation5 + $0xb0] sm:$0xff]  ;;  %v72_v18 = vld [vmem:[#allocation5 + $0xb8] sm:$0xff] }
  0x2a   :  { %224 = vmatprep.subr.bf16.mxu0 %v223_v8  ;;  %v229_v19 = vpack.c.bf16 %v54_v16, %v53_v15  ;;  %v231_v20 = vpack.c.bf16 %v72_v18, %v71_v17  ;;  %v55_v21 = vld [vmem:[#allocation5 + $0x30] sm:$0xff]  ;;  %v56_v22 = vld [vmem:[#allocation5 + $0x38] sm:$0xff]  ;;  %v73_v23 = vld [vmem:[#allocation5 + $0xc0] sm:$0xff] }
  0x2b   :  { %v74_v24 = vld [vmem:[#allocation5 + $0xc8] sm:$0xff]  ;;  %v48_v25 = vld [vmem:[#allocation3 + $0x8] sm:$0xff]  ;;  %v233_v26 = vpack.c.bf16 %v56_v22, %v55_v21  ;;  %v57_v28 = vld [vmem:[#allocation5 + $0x40] sm:$0xff] }
  0x2c   :  { %152 = vmatprep.mubr.f32.mxu0 %v48_v25  ;;  %v235_v27 = vpack.c.bf16 %v74_v24, %v73_v23  ;;  %v58_v29 = vld [vmem:[#allocation5 + $0x48] sm:$0xff]  ;;  %v75_v30 = vld [vmem:[#allocation5 + $0xd0] sm:$0xff]  ;;  %v76_v31 = vld [vmem:[#allocation5 + $0xd8] sm:$0xff] }
  0x2d   :  { %226 = vmatpush3.bf16.msra.mxu0 %v225_v13  ;;  %v237_v32 = vpack.c.bf16 %v58_v29, %v57_v28  ;;  %v239_v33 = vpack.c.bf16 %v76_v31, %v75_v30  ;;  %v59_v34 = vld [vmem:[#allocation5 + $0x50] sm:$0xff]  ;;  %v60_v35 = vld [vmem:[#allocation5 + $0x58] sm:$0xff]  ;;  %v77_v36 = vld [vmem:[#allocation5 + $0xe0] sm:$0xff] }
  0x2e   :  { %228 = vmatprep.subr.bf16.mxu0 %v227_v14  ;;  %v78_v37 = vld [vmem:[#allocation5 + $0xe8] sm:$0xff]  ;;  %v241_v38 = vpack.c.bf16 %v60_v35, %v59_v34  ;;  %v61_v40 = vld [vmem:[#allocation5 + $0x60] sm:$0xff]  ;;  %v79_v42 = vld [vmem:[#allocation5 + $0xf0] sm:$0xff] }
  0x2f   :  { %v243_v39 = vpack.c.bf16 %v78_v37, %v77_v36  ;;  %v62_v41 = vld [vmem:[#allocation5 + $0x68] sm:$0xff]  ;;  %v80_v43 = vld [vmem:[#allocation5 + $0xf8] sm:$0xff]  ;;  %v63_v46 = vld [vmem:[#allocation5 + $0x70] sm:$0xff] }
  0x30   :  { %v245_v44 = vpack.c.bf16 %v62_v41, %v61_v40  ;;  %v247_v45 = vpack.c.bf16 %v80_v43, %v79_v42  ;;  %v64_v47 = vld [vmem:[#allocation5 + $0x78] sm:$0xff]  ;;  %v47_v49 = vld [vmem:[#allocation3] sm:$0xff] }
  0x31   :  { %230 = vmatpush3.bf16.msra.mxu0 %v229_v19  ;;  %v249_v48 = vpack.c.bf16 %v64_v47, %v63_v46  ;;  %v182_v51 = vld [vmem:[%s382_s2] ss:$0 sm:$0xff] }
  0x32   :  { %232 = vmatprep.subr.bf16.mxu0 %v231_v20  ;;  %v183_v56 = vld [vmem:[%s383_s3] ss:$0 sm:$0xff] }
  0x35   :  { %234 = vmatpush3.bf16.msra.mxu0 %v233_v26 }
  0x36   :  { %236 = vmatprep.subr.bf16.mxu0 %v235_v27 }
  0x39   :  { %238 = vmatpush3.bf16.msra.mxu0 %v237_v32 }
  0x3a   :  { %240 = vmatprep.subr.bf16.mxu0 %v239_v33 }
  0x3d   :  { %242 = vmatpush3.bf16.msra.mxu0 %v241_v38 }
  0x3e   :  { %244 = vmatprep.subr.bf16.mxu0 %v243_v39 }
  0x41   :  { %246 = vmatpush3.bf16.msra.mxu0 %v245_v44 }
  0x42   :  { %248 = vmatprep.subr.bf16.mxu0 %v247_v45 }
  0x45   :  { %250 = vmatpush3.bf16.msra.mxu0 %v249_v48 }
  0x48   :  { %153 = vmatmul.mubr.f32.vlgmr.msra.gmra.mrb[0].mxu0 %v47_v49 }
 0x11b   :  { %v216_v50 = vpop.f32.mrb[0].mxu0 }
 0x11c   :  { %v217_v52 = vpop.f32.mrb[1].mxu0 }
 0x11d   :  { %v218_v53 = vadd.f32 %v217_v52, %v216_v50 }
 0x11f   :  { %v155_v54 = vadd.f32 %v218_v53, %v182_v51 }
 0x121   :  { %vm158_vm0 = vcmp.gt.f32.partialorder %v155_v54, 0.0  ;;  %v159_v55 = vmul.f32 0.01, %v155_v54 }
 0x123   :  { %v160_v57 = vsel %vm158_vm0, %v155_v54, %v159_v55 }
 0x124   :  { %v168_v58 = vmul.f32 %v183_v56, %v160_v57 }
 0x126   :  { %169 = vadd.xlane.f32.xlu0 %v168_v58 }
 0x1b3   :  { %v170_v60 = vpop.xlane.xlu0 %169 }
 0x1b4   :  { %v173_v61 = vadd.f32 %v172_v59, %v170_v60 }
 0x1b6   :  { %175 = vst.msk [vmem:[%s385_s5] sm:$0xff] %vm174_vm1, %v173_v61 }
 0x1b7   :  { %180 = vsyncpa [#allocation4], 1 }
 0x1b8   :  { %181 = vsyncpa [#allocation6], 1 }

</bundles_post_ra>
